<compile_context>
chip_gen: v6e
topology: v6e:2x2x1
jax: 0.10.0
libtpu: 0.0.40
codegen_flags: <defaults>
</compile_context>

<pallas_src>
import functools

import jax
import jax.numpy as jnp
from jax import lax
from jax.experimental import pallas as pl
from jax.experimental.pallas import tpu as pltpu


def _round_up(x, m):
    return ((x + m - 1) // m) * m


def _mxu_n_width():
    """256-wide Cout tiles on v6e/v7x (256-wide MXU); 128 on v5e and older."""
    try:
        kind = jax.devices()[0].device_kind.lower()
    except Exception:
        return 256
    for old in ("v2", "v3", "v4", "v5"):
        if old in kind:
            return 128
    return 256


def _pick_cout_tile(cout_padded):
    n = _mxu_n_width()
    return n if cout_padded % n == 0 else 128


def _vmem_limit_bytes():
    """Scoped-VMEM limit: above the 16/32 MiB defaults, below physical VMEM."""
    cap = 128 * 1024 * 1024
    try:
        cap = pltpu.get_tpu_info().vmem_capacity_bytes
    except Exception:
        pass
    return int(min(cap - 16 * 1024 * 1024, 100 * 1024 * 1024))


# ---------------------------------------------------------------------------
# Pallas kernels
# ---------------------------------------------------------------------------
def _fusion_conv3x3_relu_kernel(x_ref, w_ref, b_ref, o_ref, xcat_ref, *, H, W, C):
    """Fused concat + 3x3 conv (padding=1) + bias + ReLU, one (batch, Cout-tile).

      x_ref    : (1, L, C)   bf16  zero-padded frame, rows flattened; L=(H+2)*(W+2)
      w_ref    : (3, 3C, T)  bf16  per-kh taps; K row index = kw*C + c
      b_ref    : (1, T)      f32
      o_ref    : (1, H*(W+2), T) bf16  (cols W..W+1 of each row are garbage,
                                        sliced off in the wrapper)
      xcat_ref : (L, 3C)     bf16  VMEM scratch: the 3 kw-shifted slab views
                                   concatenated on channels; built once per
                                   batch element (inner grid index j == 0) and
                                   reused for every Cout tile.
    """
    Wf = W + 2
    L = (H + 2) * Wf
    M = H * Wf

    @pl.when(pl.program_id(1) == 0)
    def _build_kw_folded_slab():
        xs = x_ref[0]                                           # (L, C)
        xcat_ref[:, 0:C] = xs
        xcat_ref[0:L - 1, C:2 * C] = xs[1:]
        xcat_ref[L - 1:L, C:2 * C] = jnp.zeros((1, C), xs.dtype)
        xcat_ref[0:L - 2, 2 * C:3 * C] = xs[2:]
        xcat_ref[L - 2:L, 2 * C:3 * C] = jnp.zeros((2, C), xs.dtype)

    # 3 whole-plane dots, K = 3*C.  Tap kh reads slab rows [kh*Wf, kh*Wf + M):
    # acc[h*Wf + w] += sum_{kw,c} xp[h+kh, w+kw, c] * w[kh, kw, c, :].
    acc = jnp.dot(xcat_ref[0:M, :], w_ref[0],
                  preferred_element_type=jnp.float32)
    for kh in (1, 2):
        acc = acc + jnp.dot(xcat_ref[kh * Wf:kh * Wf + M, :], w_ref[kh],
                            preferred_element_type=jnp.float32)
    o_ref[0] = jnp.maximum(acc + b_ref[...], 0.0).astype(o_ref.dtype)


def _conv1x1_kernel(x_ref, w_ref, b_ref, o_ref):
    """1x1 conv as one (TM, Cin) x (Cin, Coutp) matmul per grid step."""
    o_ref[...] = (jnp.dot(x_ref[...], w_ref[...],
                          preferred_element_type=jnp.float32)
                  + b_ref[...]).astype(o_ref.dtype)


# ---------------------------------------------------------------------------
# Wrappers (layout plumbing: concat, padding, reshapes)
# ---------------------------------------------------------------------------
def fusion_pallas(x1, x2, w_hwio, b, *, compute_dtype=jnp.bfloat16):
    """x1: (B,H,W,C1), x2: (B,H,W,C2) NHWC.  w_hwio: (3,3,C1+C2,Cout).  b: (Cout,).

    Returns Conv3x3(pad=1)+ReLU of the channel-concat, NHWC, dtype=compute_dtype.
    """
    B, H, W, C1 = x1.shape
    assert x2.shape[:3] == (B, H, W)
    C2 = x2.shape[-1]
    C = C1 + C2
    Cout = w_hwio.shape[-1]
    assert w_hwio.shape == (3, 3, C, Cout)

    Wf = W + 2
    L = (H + 2) * Wf
    M = H * Wf
    Coutp = _round_up(Cout, 128)            # lane-dense weight/output tiles
    TCout = _pick_cout_tile(Coutp)
    n_j = Coutp // TCout

    # concat once (torch.cat((x1, x2), dim=1)), cast, zero-pad, flatten rows.
    x = jnp.concatenate([x1, x2], axis=-1).astype(compute_dtype)
    xp = jnp.pad(x, ((0, 0), (1, 1), (1, 1), (0, 0))).reshape(B, L, C)

    # (3, 3, C, Cout) -> (3, 3*C, Coutp): K rows ordered (kw, c), matching the
    # kw-folded slab layout the kernel builds in VMEM.
    w = w_hwio.astype(compute_dtype).reshape(3, 3 * C, Cout)
    b2 = b.reshape(1, Cout).astype(jnp.float32)
    if Coutp != Cout:
        w = jnp.pad(w, ((0, 0), (0, 0), (0, Coutp - Cout)))
        b2 = jnp.pad(b2, ((0, 0), (0, Coutp - Cout)))

    kernel = functools.partial(_fusion_conv3x3_relu_kernel, H=H, W=W, C=C)
    # Grid: batch outer ("parallel"), Cout tiles inner ("arbitrary", so the
    # kw-folded scratch built at j == 0 is reused in-order for j > 0).  The
    # slab block index ignores j -> fetched once per batch element.
    # NOTE: at large B with big weights, grid=(n_j, B) (weight-resident) can be
    # cheaper on HBM traffic; decide per deployment B / C / Cout.
    out = pl.pallas_call(
        kernel,
        out_shape=jax.ShapeDtypeStruct((B, M, Coutp), compute_dtype),
        grid=(B, n_j),
        in_specs=[
            pl.BlockSpec((1, L, C), lambda bi, j: (bi, 0, 0)),
            pl.BlockSpec((3, 3 * C, TCout), lambda bi, j: (0, 0, j)),
            pl.BlockSpec((1, TCout), lambda bi, j: (0, j)),
        ],
        out_specs=pl.BlockSpec((1, M, TCout), lambda bi, j: (bi, 0, j)),
        scratch_shapes=[pltpu.VMEM((L, 3 * C), compute_dtype)],
        compiler_params=pltpu.CompilerParams(
            dimension_semantics=("parallel", "arbitrary"),
            vmem_limit_bytes=_vmem_limit_bytes()),
    )(xp, w, b2)
    # Drop the 2 garbage columns per row and padded output channels; this
    # slice fuses into the next layer's concat/pad.
    return out.reshape(B, H, Wf, Coutp)[:, :, :W, :Cout]


def conv1x1_pallas(x, w_hwio, b, *, compute_dtype=jnp.bfloat16):
    """x: (B,H,W,Cin) NHWC.  w_hwio: (1,1,Cin,Cout).  b: (Cout,).  f32 output."""
    B, H, W, Cin = x.shape
    Cout = w_hwio.shape[-1]
    M = B * H * W
    TM = min(_round_up(M, 16), 2048)        # large M tiles -> few grid steps
    Mp = _round_up(M, TM)
    Coutp = _round_up(Cout, 128)            # lane-dense stores (channels=3)

    x2 = jnp.pad(x.reshape(M, Cin).astype(compute_dtype), ((0, Mp - M), (0, 0)))
    w2 = jnp.pad(w_hwio.reshape(Cin, Cout).astype(compute_dtype),
                 ((0, 0), (0, Coutp - Cout)))
    b2 = jnp.pad(b.reshape(1, Cout).astype(jnp.float32),
                 ((0, 0), (0, Coutp - Cout)))

    out = pl.pallas_call(
        _conv1x1_kernel,
        out_shape=jax.ShapeDtypeStruct((Mp, Coutp), jnp.float32),
        grid=(Mp // TM,),
        in_specs=[
            pl.BlockSpec((TM, Cin), lambda i: (i, 0)),
            pl.BlockSpec((Cin, Coutp), lambda i: (0, 0)),
            pl.BlockSpec((1, Coutp), lambda i: (0, 0)),
        ],
        out_specs=pl.BlockSpec((TM, Coutp), lambda i: (i, 0)),
        compiler_params=pltpu.CompilerParams(
            dimension_semantics=("parallel",),
            vmem_limit_bytes=_vmem_limit_bytes()),
    )(x2, w2, b2)
    return out[:M, :Cout].reshape(B, H, W, Cout)


def tokens_to_nhwc(tokens):
    # (B, 1+N, D) -> drop CLS token -> (B, P, P, D); pixel (h, w) == token
    # h*P + w, identical to PyTorch's transpose(1,2).reshape(B, D, P, P).
    o = tokens[:, 1:, :]
    B, N, D = o.shape
    P = round(N ** 0.5)
    assert P * P == N, "token count (minus CLS) must be a perfect square"
    return o.reshape(B, P, P, D)


def image_decoder_vit_forward(all_out, params, sample_ind,
                              *, compute_dtype=jnp.bfloat16):
    outs = [tokens_to_nhwc(all_out[ind]) for ind in sample_ind]
    x = outs[0]
    # zip stops at len(fusion) == len(hidden_size)-1, so outs[3] is unused,
    # exactly matching the PyTorch forward.
    for out, (w, b) in zip(outs[1:], params["fusion"]):
        x = fusion_pallas(x, out, w, b, compute_dtype=compute_dtype)
    # TODO(synk): the 1x1 conv could be fused as an epilogue of the last
    # fusion layer (per-j accumulation) to save one HBM round trip.
    x = conv1x1_pallas(x, params["conv1_w"], params["conv1_b"],
                       compute_dtype=compute_dtype)
    return jnp.transpose(x, (0, 3, 1, 2))    # NCHW, like nn.Conv2d output


# ---------------------------------------------------------------------------
# Pure-JAX reference with the same bf16-operand / f32-accumulate discipline
# (for verification only)
# ---------------------------------------------------------------------------
def reference_forward(all_out, params, sample_ind, *, compute_dtype=jnp.bfloat16):
    outs = [tokens_to_nhwc(all_out[ind]) for ind in sample_ind]
    x = outs[0]
    dn = ("NHWC", "HWIO", "NHWC")
    for out, (w, b) in zip(outs[1:], params["fusion"]):
        xin = jnp.concatenate([x, out], axis=-1).astype(compute_dtype)
        y = lax.conv_general_dilated(xin, w.astype(compute_dtype), (1, 1), "SAME",
                                     dimension_numbers=dn,
                                     preferred_element_type=jnp.float32)
        x = jnp.maximum(y + b[None, None, None, :].astype(jnp.float32), 0.0)
    y = lax.conv_general_dilated(x.astype(compute_dtype),
                                 params["conv1_w"].astype(compute_dtype),
                                 (1, 1), "SAME", dimension_numbers=dn,
                                 preferred_element_type=jnp.float32)
    y = y + params["conv1_b"][None, None, None, :].astype(jnp.float32)
    return jnp.transpose(y, (0, 3, 1, 2))


# ---------------------------------------------------------------------------
if __name__ == "__main__":
    # Small config consistent with the module: all hidden sizes equal (ViT dim),
    # sample_ind picks 4 transformer-layer outputs.
    channels = 3
    hidden_size = [32, 32, 32]
    sample_ind = [11, 8, 5, 2]
    assert len(hidden_size) == len(sample_ind) - 1
    B, P = 2, 8
    N = P * P
    D = hidden_size[0]
    n_layers = 12

    key = jax.random.PRNGKey(0)
    key, *subkeys = jax.random.split(key, n_layers + 1)
    all_out = [jax.random.normal(k, (B, N + 1, D), dtype=jnp.float32)
               for k in subkeys]

    # Deterministic parameter init (same shapes the nn.Conv2d layers would
    # hold, stored HWIO).
    params = {"fusion": []}
    for cin, cout in zip(hidden_size[:-1], hidden_size[1:]):
        key, kw_, kb_ = jax.random.split(key, 3)
        w = jax.random.normal(kw_, (3, 3, cin + cout, cout), jnp.float32) * 0.05
        b = jax.random.normal(kb_, (cout,), jnp.float32) * 0.05
        params["fusion"].append((w, b))
    key, kw_, kb_ = jax.random.split(key, 3)
    params["conv1_w"] = jax.random.normal(
        kw_, (1, 1, hidden_size[-1], channels), jnp.float32) * 0.05
    params["conv1_b"] = jax.random.normal(kb_, (channels,), jnp.float32) * 0.05

    out = jax.block_until_ready(
        image_decoder_vit_forward(all_out, params, sample_ind))
    ref = jax.block_until_ready(
        reference_forward(all_out, params, sample_ind))

    assert out.shape == (B, channels, P, P), out.shape
    if not jnp.allclose(out, ref, atol=1e-2, rtol=1e-2):
        raise AssertionError("Pallas output mismatch vs JAX reference")
    print("KERNEL_OK")
</pallas_src>

<mosaic_0001>
module attributes {stable_mosaic.version = 11 : i64} {
  func.func @_fusion_conv3x3_relu_kernel(%arg0: i32, %arg1: i32, %arg2: memref<1x100x64xbf16, #tpu.memory_space<vmem>>, %arg3: memref<3x192x128xbf16, #tpu.memory_space<vmem>>, %arg4: memref<1x128xf32, #tpu.memory_space<vmem>>, %arg5: memref<1x80x128xbf16, #tpu.memory_space<vmem>>, %arg6: memref<100x192xbf16, #tpu.memory_space<vmem>>) attributes {dimension_semantics = [#tpu.dimension_semantics<parallel>, #tpu.dimension_semantics<arbitrary>], iteration_bounds = array<i64: 2, 1>, scalar_prefetch = 0 : i64, scratch_operands = 1 : i64, tpu.core_type = #tpu.core_type<tc>, window_params = [{transform_indices = @transform_0, window_bounds = array<i64: 1, 100, 64>}, {transform_indices = @transform_1, window_bounds = array<i64: 3, 192, 128>}, {transform_indices = @transform_2, window_bounds = array<i64: 1, 128>}, {transform_indices = @transform_3, window_bounds = array<i64: 1, 80, 128>}]} {
    %c0_i32 = arith.constant 0 : i32
    %0 = arith.cmpi eq, %arg1, %c0_i32 : i32
    %1 = arith.extui %0 : i1 to i32
    %c0_i32_0 = arith.constant 0 : i32
    %2 = arith.cmpi ne, %1, %c0_i32_0 : i32
    scf.if %2 {
      %c0_19 = arith.constant 0 : index
      %c0_20 = arith.constant 0 : index
      %c0_21 = arith.constant 0 : index
      %26 = vector.load %arg2[%c0_19, %c0_20, %c0_21] : memref<1x100x64xbf16, #tpu.memory_space<vmem>>, vector<1x100x64xbf16>
      %27 = vector.shape_cast %26 : vector<1x100x64xbf16> to vector<100x64xbf16>
      %c0_22 = arith.constant 0 : index
      %c0_23 = arith.constant 0 : index
      %28 = vector.load %arg6[%c0_22, %c0_23] : memref<100x192xbf16, #tpu.memory_space<vmem>>, vector<100x64xbf16>
      tpu.vector_store %arg6[%c0_22, %c0_23], %27 {strides = array<i32>} : memref<100x192xbf16, #tpu.memory_space<vmem>>, vector<100x64xbf16>,
      %29 = vector.extract_strided_slice %27 {offsets = [1, 0], sizes = [99, 64], strides = [1, 1]} : vector<100x64xbf16> to vector<99x64xbf16>
      %c0_24 = arith.constant 0 : index
      %c64 = arith.constant 64 : index
      %30 = vector.load %arg6[%c0_24, %c64] : memref<100x192xbf16, #tpu.memory_space<vmem>>, vector<99x64xbf16>
      tpu.vector_store %arg6[%c0_24, %c64], %29 {strides = array<i32>} : memref<100x192xbf16, #tpu.memory_space<vmem>>, vector<99x64xbf16>,
      %cst_25 = arith.constant 0.000000e+00 : bf16
      %31 = vector.broadcast %cst_25 : bf16 to vector<1x64xbf16>
      %c99 = arith.constant 99 : index
      %c64_26 = arith.constant 64 : index
      %32 = vector.load %arg6[%c99, %c64_26] : memref<100x192xbf16, #tpu.memory_space<vmem>>, vector<1x64xbf16>
      tpu.vector_store %arg6[%c99, %c64_26], %31 {strides = array<i32>} : memref<100x192xbf16, #tpu.memory_space<vmem>>, vector<1x64xbf16>,
      %33 = vector.extract_strided_slice %27 {offsets = [2, 0], sizes = [98, 64], strides = [1, 1]} : vector<100x64xbf16> to vector<98x64xbf16>
      %c0_27 = arith.constant 0 : index
      %c128 = arith.constant 128 : index
      %34 = vector.load %arg6[%c0_27, %c128] : memref<100x192xbf16, #tpu.memory_space<vmem>>, vector<98x64xbf16>
      tpu.vector_store %arg6[%c0_27, %c128], %33 {strides = array<i32>} : memref<100x192xbf16, #tpu.memory_space<vmem>>, vector<98x64xbf16>,
      %cst_28 = arith.constant 0.000000e+00 : bf16
      %35 = vector.broadcast %cst_28 : bf16 to vector<2x64xbf16>
      %c98 = arith.constant 98 : index
      %c128_29 = arith.constant 128 : index
      %36 = vector.load %arg6[%c98, %c128_29] : memref<100x192xbf16, #tpu.memory_space<vmem>>, vector<2x64xbf16>
      tpu.vector_store %arg6[%c98, %c128_29], %35 {strides = array<i32>} : memref<100x192xbf16, #tpu.memory_space<vmem>>, vector<2x64xbf16>,
    } else {
    }
    %c0 = arith.constant 0 : index
    %c0_1 = arith.constant 0 : index
    %3 = vector.load %arg6[%c0, %c0_1] : memref<100x192xbf16, #tpu.memory_space<vmem>>, vector<80x192xbf16>
    %c0_2 = arith.constant 0 : index
    %c0_3 = arith.constant 0 : index
    %c0_4 = arith.constant 0 : index
    %4 = vector.load %arg3[%c0_2, %c0_3, %c0_4] : memref<3x192x128xbf16, #tpu.memory_space<vmem>>, vector<1x192x128xbf16>
    %5 = vector.shape_cast %4 : vector<1x192x128xbf16> to vector<192x128xbf16>
    %cst = arith.constant dense<0.000000e+00> : vector<80x128xf32>
    %6 = tpu.matmul %3, %5, %cst {dimension_numbers = #tpu.dot_dimension_numbers<[1], [0], [0], [1], [0, 0, 1, 1], [], []>} : vector<80x192xbf16>, vector<192x128xbf16>, vector<80x128xf32> -> vector<80x128xf32>
    %c10 = arith.constant 10 : index
    %c0_5 = arith.constant 0 : index
    %7 = vector.load %arg6[%c10, %c0_5] : memref<100x192xbf16, #tpu.memory_space<vmem>>, vector<80x192xbf16>
    %c1 = arith.constant 1 : index
    %c0_6 = arith.constant 0 : index
    %c0_7 = arith.constant 0 : index
    %8 = vector.load %arg3[%c1, %c0_6, %c0_7] : memref<3x192x128xbf16, #tpu.memory_space<vmem>>, vector<1x192x128xbf16>
    %9 = vector.shape_cast %8 : vector<1x192x128xbf16> to vector<192x128xbf16>
    %cst_8 = arith.constant dense<0.000000e+00> : vector<80x128xf32>
    %10 = tpu.matmul %7, %9, %cst_8 {dimension_numbers = #tpu.dot_dimension_numbers<[1], [0], [0], [1], [0, 0, 1, 1], [], []>} : vector<80x192xbf16>, vector<192x128xbf16>, vector<80x128xf32> -> vector<80x128xf32>
    %11 = arith.addf %6, %10 : vector<80x128xf32>
    %c20 = arith.constant 20 : index
    %c0_9 = arith.constant 0 : index
    %12 = vector.load %arg6[%c20, %c0_9] : memref<100x192xbf16, #tpu.memory_space<vmem>>, vector<80x192xbf16>
    %c2 = arith.constant 2 : index
    %c0_10 = arith.constant 0 : index
    %c0_11 = arith.constant 0 : index
    %13 = vector.load %arg3[%c2, %c0_10, %c0_11] : memref<3x192x128xbf16, #tpu.memory_space<vmem>>, vector<1x192x128xbf16>
    %14 = vector.shape_cast %13 : vector<1x192x128xbf16> to vector<192x128xbf16>
    %cst_12 = arith.constant dense<0.000000e+00> : vector<80x128xf32>
    %15 = tpu.matmul %12, %14, %cst_12 {dimension_numbers = #tpu.dot_dimension_numbers<[1], [0], [0], [1], [0, 0, 1, 1], [], []>} : vector<80x192xbf16>, vector<192x128xbf16>, vector<80x128xf32> -> vector<80x128xf32>
    %16 = arith.addf %11, %15 : vector<80x128xf32>
    %c0_13 = arith.constant 0 : index
    %c0_14 = arith.constant 0 : index
    %17 = vector.load %arg4[%c0_13, %c0_14] : memref<1x128xf32, #tpu.memory_space<vmem>>, vector<1x128xf32>
    %18 = vector.broadcast %17 : vector<1x128xf32> to vector<80x128xf32>
    %19 = arith.addf %16, %18 : vector<80x128xf32>
    %cst_15 = arith.constant 0.000000e+00 : f32
    %20 = vector.broadcast %cst_15 : f32 to vector<80x128xf32>
    %21 = arith.maximumf %19, %20 : vector<80x128xf32>
    %22 = arith.truncf %21 : vector<80x128xf32> to vector<80x128xbf16>
    %c0_16 = arith.constant 0 : index
    %c0_17 = arith.constant 0 : index
    %c0_18 = arith.constant 0 : index
    %23 = vector.load %arg5[%c0_16, %c0_17, %c0_18] : memref<1x80x128xbf16, #tpu.memory_space<vmem>>, vector<1x80x128xbf16>
    %24 = vector.shape_cast %23 : vector<1x80x128xbf16> to vector<80x128xbf16>
    %25 = vector.shape_cast %22 : vector<80x128xbf16> to vector<1x80x128xbf16>
    tpu.vector_store %arg5[%c0_16, %c0_17, %c0_18], %25 {strides = array<i32>} : memref<1x80x128xbf16, #tpu.memory_space<vmem>>, vector<1x80x128xbf16>,
    return
  }
  func.func @transform_0(%arg0: i32, %arg1: i32) -> (i32, i32, i32) {
    %c0_i32 = arith.constant 0 : i32
    %c0_i32_0 = arith.constant 0 : i32
    %c0_i32_1 = arith.constant 0 : i32
    return %arg0, %c0_i32, %c0_i32_0 : i32, i32, i32
  }
  func.func @transform_1(%arg0: i32, %arg1: i32) -> (i32, i32, i32) {
    %c0_i32 = arith.constant 0 : i32
    %c0_i32_0 = arith.constant 0 : i32
    %c0_i32_1 = arith.constant 0 : i32
    return %c0_i32, %c0_i32_0, %arg1 : i32, i32, i32
  }
  func.func @transform_2(%arg0: i32, %arg1: i32) -> (i32, i32) {
    %c0_i32 = arith.constant 0 : i32
    %c0_i32_0 = arith.constant 0 : i32
    return %c0_i32, %arg1 : i32, i32
  }
  func.func @transform_3(%arg0: i32, %arg1: i32) -> (i32, i32, i32) {
    %c0_i32 = arith.constant 0 : i32
    %c0_i32_0 = arith.constant 0 : i32
    return %arg0, %c0_i32, %arg1 : i32, i32, i32
  }
}

</mosaic_0001>

<bundles_post_ra>
// kernel: tpu_custom_call.1
= control target key start
LH: loop header
LB: loop body
LE: loop exit
PB: predicated region body
PF: predicated region fallthrough
CT: control target
= control target key end

     0   :  { %8 = vsyncpa [#allocation4], 0  ;;  %s2470_s0 = inlined_call_operand.vmem [shape: bf16[2,100,64], index: 0, kind: input, shape index: {}]   ;;  %s2471_s1 = inlined_call_operand.hbm [shape: bf16[3,192,128], index: 1, kind: input, shape index: {}]   ;;  %s2472_s2 = inlined_call_operand.vmem [shape: f32[1,128], index: 2, kind: input, shape index: {}]   ;;  %s2473_s3 = inlined_call_operand.hbm [shape: bf16[2,80,128], index: 3, kind: output, shape index: {}]  }
   0x1   :  { %9 = vsyncpa [#allocation5], 0 }
   0x2   :  { %11 = vsyncpa [#allocation5 + $0x1], 0  ;;  %s1912_s12 = smov 0   ;;  %s1914_s13 = smov 0  }
   0x3   :  { %s1916_s14 = smov 0   ;;  %s1918_s15 = smov 0  }
   0x4   :  { %s1920_s16 = smov 0   ;;  %s1922_s17 = smov 0  }
   0x5 LB: > { %s1477_s18 = sadd.s32 4294967295, %s1883_s17   ;;  %s1478_s19 = sadd.s32 4294967294, %s1883_s17   ;;  %s1883_s17 = sphi %s1922_s17, %s17_s17   ;;  %s1879_s16 = sphi %s1920_s16, %s2490_s16   ;;  %s1875_s15 = sphi %s1918_s15, %s2489_s15   ;;  %s1871_s14 = sphi %s1916_s14, %s2488_s14   ;;  %s1867_s13 = sphi %s1914_s13, %s2487_s13   ;;  %s1863_s12 = sphi %s1912_s12, %s2486_s12  }
   0x6   : > { %s29_s20 = sadd.s32 1, %s1879_s16  ;;  %s116_s21 = sadd.s32 1, %s1871_s14 }
   0x7   : > { %p31_p0 = scmp.ge.s32.totalorder %s29_s20, 2  ;;  %p126_p1 = scmp.ne.s32.totalorder %s1871_s14, %s1867_s13 }
   0x8   : > { %p127_p2 = scmp.eq.s32.totalorder %s1477_s18, 1  ;;  %p132_p3 = scmp.ne.s32.totalorder %s1867_s13, %s1863_s12 }
   0x9   : > { %s2492_s20 = smov (%p31_p0, %s29_s20), 0  ;;  %p133_p5 = scmp.eq.s32.totalorder %s1478_s19, 1 }
   0xa   : > { %p1952_p4 = por %p127_p2, %p126_p1  ;;  %s111_s23 = ssub.s32 %s1879_s16, %s2492_s20 }
   0xb   : > { %p1479_p6 = scmp.ge.s32.totalorder %s1883_s17, 1  ;;  %p114_p7 = scmp.eq.s32.totalorder %s111_s23, 0 }
   0xc   : > { %p1959_p8 = por %p133_p5, %p132_p3  ;;  %p140_p9 = scmp.lt.s32.totalorder %s1883_s17, 3 }
   0xd   : > { %s1965_s25 = scalar_select %p114_p7, %s1871_s14, %s116_s21  }
   0xe   : > { %p1967_p10 = pnand %p1479_p6, %p140_p9  ;;  %p1971_p11 = scmp.eq.s32.totalorder %s1477_s18, 0 }
   0xf   : > { %s1885_s28 = smov [#allocation3]  }
  0x10   : > { %p1658_p12 = pneg %p1967_p10  ;;  %s154_s29 = sshll.u32 %s1885_s28, 4  ;;  %s155_s29 = int_to_ptr.vmem [resolvable:$true] %s154_s29 }
  0x11   : > { %s1788_s30 = scalar_lea.vmem %s155_s29, 4608  ;;  %p1796_p5 = scmp.lt.s32.totalorder %s155_s29, %s155_s29 }
  0x12   : > { %p1659_p13 = pnand %p1971_p11, %p1658_p12  ;;  %p1789_p1 = scmp.ne.s32.totalorder %s155_s29, %s1788_s30 }
  0x13   : > { %p1797_p6 = scmp.lt.s32.totalorder %s1788_s30, %s1788_s30 }
  0x14   : > { %p1779_p0 = pneg %p1659_p13 }
  0x15   : > { %p1798_p7 = por %p1797_p6, %p1796_p5 }
  0x16   : > { %p1791_p2 = pnand %p1789_p1, %p1779_p0 }
  0x18   : > { %p1792_p3 = pneg %p1791_p2 }
  0x1a   : > { %p1799_p9 = pnand %p1798_p7, %p1792_p3 }
  0x1c   : > { %1802 = shalt.err (!%p1799_p9)
}
  0x1d   : > { %s1886_s4 = smov 64   ;;  %s1887_s5 = smov 4  }
  0x1e   : > { %1661 = dma.hbm_to_vmem [thread:$0]  (!%p1659_p13), %s2471_s1, 4608, %s155_s29, [#allocation4], %s1886_s4, %s1886_s4, %s1887_s5  }
  0x1f   : > { %184 = sbr.rel (%p1967_p10) target bundleno = 476 (0x1dc), region = 32 }
  0x24   : > { %1854 = dma.done.wait (%p1971_p11), [#allocation4], 4608  }
  0x25   : > { %1856 = vsyncadd (%p1971_p11), [#allocation4], 4294962688  ;;  %p211_p12 = scmp.lt.s32.totalorder %s1875_s15, 1  ;;  %v1888_v0 = vmov 0   ;;  %vm237_vm0 = vcmask 519168   ;;  %vm461_vm3 = vcmask 1042432  }
  0x26   : > { %754 = vmatprep.subr.bf16.mxu0 %v1888_v0  ;;  %935 = vmatprep.subr.bf16.mxu1 %v1888_v0  ;;  %vm252_vm1 = vsmask.f32 3328  ;;  %vm253_vm2 = vsmask.f32 7440  ;;  %vm462_vm4 = vcmask 1046532   ;;  %v1723_v37 = vld [vmem:[#allocation3 + $0x98] sm:$0xff]  }
  0x27   : > { %s212_s8 = scalar_select %p211_p12, %s1875_s15, 1  ;;  %vm2015_vm5 = vmor %vm461_vm3, %vm462_vm4  ;;  %755 = vmatpush1.bf16.msra.mxu0 %v1723_v37  ;;  %v1724_v48 = vld [vmem:[#allocation3 + $0x38] sm:$0xff]   ;;  %v1725_v53 = vld [vmem:[#allocation3 + $0x90] sm:$0xff]   ;;  %vm527_vm7 = vcmask 516096   ;;  %vm250_vm8 = vcmask 517120   ;;  %vm529_vm9 = vcmask 517121  }
  0x28   : > { %vm2060_vm6 = vmor %vm252_vm1, %vm253_vm2  ;;  %756 = vmatprep.subr.bf16.mxu0 %v1888_v0  ;;  %s1889_s19 = smov 64   ;;  %936 = vmatpush1.bf16.msra.mxu1 %v1724_v48  ;;  %v1731_v48 = vld [vmem:[#allocation3 + $0x78] sm:$0xff]   ;;  %v1737_v9 = vld [vmem:[#allocation3 + $0x60] sm:$0xff]   ;;  %530 = vst.msk [vmem:[#allocation2 + $0x64] sm:$0x2] %vm529_vm9, %v1888_v0  ;;  %vm423_vm10 = vcmask 1043968  }
  0x29   : > { %s1650_s9 = smul.u32 52, %s212_s8  ;;  %937 = vmatprep.subr.bf16.mxu1 %v1888_v0  ;;  %v1742_v31 = vld [vmem:[#allocation3 + $0x50] sm:$0xff]   ;;  %vm638_vm11 = vcmask 1046528   ;;  %vm738_vm12 = vcmask 523264   ;;  %vm436_vm13 = vcmask 1041920   ;;  %vm1089_vm3 = vcmask 1045504  }
  0x2a   : > { %vm437_vm14 = vsmask.f32 1280  ;;  %vm443_vm1 = vsmask.f32 7942  ;;  %s208_s26 = sand.u32 1, %s1867_s13   ;;  %s1651_s30 = smul.u32 640, %s1875_s15 }
  0x2b   : > { %s1995_s18 = scalar_lea.vmem %s2470_s0, %s1650_s9  ;;  %757 = vmatpush1.bf16.msra.mxu0 %v1725_v53  ;;  %vm2262_vm15 = vmand %vm436_vm13, %vm437_vm14  ;;  %s1649_s27 = smul.u32 40, %s208_s26 }
  0x2c   : > { %v1998_v1 = vld [vmem:[%s1995_s18 + $0xc] sm:$0xf]  ;;  %v228_v2 = vld [vmem:[%s1995_s18 + $0x10] sm:$0xf]  ;;  %v2002_v3 = vld [vmem:[%s1995_s18 + $0x4] sm:$0xf]  ;;  %758 = vmatprep.subr.bf16.mxu0 %v1888_v0  ;;  %s2418_s6 = scalar_lea.hbm %s2473_s3, %s1651_s30 }
  0x2d   : > { %v285_v4 = vshll.u32 %v1998_v1, 16  ;;  %v289_v5 = vshrl.u32 %v1998_v1, 16  ;;  %v295_v6 = vshll.u32 %v228_v2, 16  ;;  %v472_v7 = vrot.slane %v1998_v1, 5  ;;  %241 = vst.msk [vmem:[#allocation2 + $0x18] sm:$0xf] %vm237_vm0, %v1998_v1 }
  0x2e   : > { %242 = vst.msk [vmem:[#allocation2 + $0x20] sm:$0xf] %vm237_vm0, %v228_v2  ;;  %v2011_v8 = vld [vmem:[%s1995_s18 + $0x8] sm:$0xf]  ;;  %239 = vst.msk [vmem:[#allocation2 + $0x8] sm:$0xf] %vm237_vm0, %v2002_v3 }
  0x2f   : > { %v475_v10 = vrot.slane %v228_v2, 5  ;;  %v265_v11 = vshll.u32 %v2002_v3, 16  ;;  %v269_v12 = vshrl.u32 %v2002_v3, 16  ;;  %v275_v13 = vshll.u32 %v2011_v8, 16  ;;  %240 = vst.msk [vmem:[#allocation2 + $0x10] sm:$0xf] %vm237_vm0, %v2011_v8 }
  0x30   : > { %v2025_v14 = vld [vmem:[%s1995_s18 + $0x14] sm:$0xf]  ;;  %v2027_v15 = vrot.slane %v285_v4, 5  ;;  %v291_v16 = vrot.slane %v289_v5, 4  ;;  %v2029_v17 = vrot.slane %v295_v6, 5  ;;  %v474_v18 = vrot.slane %v472_v7, 4 }
  0x31   : > { %243 = vst.msk [vmem:[#allocation2 + $0x28] sm:$0xf] %vm237_vm0, %v2025_v14  ;;  %v2034_v19 = vld [vmem:[%s1995_s18 + $0x18] sm:$0xf]  ;;  %v477_v20 = vrot.slane %v475_v10, 4  ;;  %v2036_v21 = vrot.slane %v265_v11, 5 }
  0x32   : > { %v271_v22 = vrot.slane %v269_v12, 4  ;;  %v2038_v23 = vrot.slane %v275_v13, 5  ;;  %244 = vst.msk [vmem:[#allocation2 + $0x30] sm:$0xf] %vm237_vm0, %v2034_v19  ;;  %v2043_v24 = vld [vmem:[%s1995_s18] sm:$0xf]  ;;  %v292_v25 = vor.u32 %v291_v16, %v2027_v15  ;;  %v476_v26 = vsel %vm2015_vm5, %v474_v18, %v475_v10 }
  0x33   : > { %v466_v27 = vrot.slane %v2002_v3, 5  ;;  %v469_v28 = vrot.slane %v2011_v8, 5  ;;  %238 = vst.msk [vmem:[#allocation2] sm:$0xf] %vm237_vm0, %v2043_v24  ;;  %v2053_v29 = vld [vmem:[%s1995_s18 + $0x1c] sm:$0xf] }
  0x34   : > { %v2056_v30 = vld [vmem:[%s1995_s18 + $0x20] sm:$0xf]  ;;  %518 = vst.msk [vmem:[#allocation2 + $0x1c] sm:$0xf] %vm237_vm0, %v476_v26  ;;  %v272_v32 = vor.u32 %v271_v22, %v2036_v21  ;;  %v299_v33 = vshrl.u32 %v228_v2, 16  ;;  %v305_v34 = vshll.u32 %v2025_v14, 16 }
  0x35   : > { %v478_v35 = vrot.slane %v2025_v14, 5  ;;  %245 = vst.msk [vmem:[#allocation2 + $0x38] sm:$0xf] %vm237_vm0, %v2053_v29  ;;  %246 = vst.msk [vmem:[#allocation2 + $0x40] sm:$0xf] %vm237_vm0, %v2056_v30  ;;  %v293_v38 = vrot.slane %v292_v25, 4 }
  0x36   : > { %v2073_v36 = vld [vmem:[%s1995_s18 + $0x24] sm:$0xf]  ;;  %v468_v39 = vrot.slane %v466_v27, 4  ;;  %v471_v40 = vrot.slane %v469_v28, 4  ;;  %v279_v41 = vshrl.u32 %v2011_v8, 16  ;;  %v273_v43 = vrot.slane %v272_v32, 4 }
  0x37   : > { %247 = vst.msk [vmem:[#allocation2 + $0x48] sm:$0xf] %vm237_vm0, %v2073_v36  ;;  %v2081_v42 = vld [vmem:[%s1995_s18 + $0x28] sm:$0xf]  ;;  %v301_v44 = vrot.slane %v299_v33, 4  ;;  %v307_v45 = vrot.slane %v305_v34, 5  ;;  %v479_v46 = vsel %vm2015_vm5, %v477_v20, %v478_v35  ;;  %v298_v49 = vsel %vm2060_vm6, %v293_v38, %v2029_v17 }
  0x38   : > { %248 = vst.msk [vmem:[#allocation2 + $0x50] sm:$0xf] %vm237_vm0, %v2081_v42  ;;  %v2088_v47 = vld [vmem:[%s1995_s18 + $0x2c] sm:$0xf]  ;;  %v470_v50 = vsel %vm2015_vm5, %v468_v39, %v469_v28  ;;  %v473_v51 = vsel %vm2015_vm5, %v471_v40, %v472_v7  ;;  %v480_v52 = vrot.slane %v478_v35, 4  ;;  %390 = vrot.lane.b32.xlu1 %v298_v49, %s1889_s19  ;;  %v278_v54 = vsel %vm2060_vm6, %v273_v43, %v2038_v23  ;;  %v1726_v4 = vld [vmem:[#allocation3 + $0x30] sm:$0xff]  }
  0x39   : > { %519 = vst.msk [vmem:[#allocation2 + $0x24] sm:$0xf] %vm237_vm0, %v479_v46  ;;  %249 = vst.msk [vmem:[#allocation2 + $0x58] sm:$0xf] %vm237_vm0, %v2088_v47  ;;  %v302_v55 = vor.u32 %v301_v44, %v2029_v17  ;;  %v281_v56 = vrot.slane %v279_v41, 4  ;;  %v309_v57 = vshrl.u32 %v2025_v14, 16  ;;  %386 = vrot.lane.b32.xlu0 %v278_v54, %s1889_s19  ;;  %938 = vmatpush1.bf16.msra.mxu1 %v1726_v4 }
  0x3a   : > { %516 = vst.msk [vmem:[#allocation2 + $0xc] sm:$0xf] %vm237_vm0, %v470_v50  ;;  %517 = vst.msk [vmem:[#allocation2 + $0x14] sm:$0xf] %vm237_vm0, %v473_v51  ;;  %v315_v58 = vshll.u32 %v2034_v19, 16  ;;  %v481_v59 = vrot.slane %v2034_v19, 5  ;;  %939 = vmatprep.subr.bf16.mxu1 %v1888_v0 }
  0x3b   : > { %v256_v60 = vshrl.u32 %v2043_v24, 16  ;;  %v259_v61 = vshll.u32 %v2043_v24, 16  ;;  %v303_v62 = vrot.slane %v302_v55, 4  ;;  %v282_v63 = vor.u32 %v281_v56, %v2038_v23  ;;  %v1727_v10 = vld [vmem:[#allocation3 + $0x88] sm:$0xff]   ;;  %v1729_v40 = vld [vmem:[#allocation3 + $0x80] sm:$0xff]   ;;  %v1732_v54 = vld [vmem:[#allocation3 + $0x18] sm:$0xff]  }
  0x3c   : > { %v311_v1 = vrot.slane %v309_v57, 4  ;;  %v1486_v2 = vrot.slane %v2043_v24, 9  ;;  %v2117_v5 = vrot.slane %v315_v58, 5  ;;  %v482_v6 = vsel %vm2015_vm5, %v480_v52, %v481_v59  ;;  %v1728_v22 = vld [vmem:[#allocation3 + $0x28] sm:$0xff]   ;;  %759 = vmatpush1.bf16.msra.mxu0 %v1727_v10  ;;  %v1730_v46 = vld [vmem:[#allocation3 + $0x20] sm:$0xff]   ;;  %s2396_s28 = scalar_lea.vmem [#allocation6], %s1649_s27 }
  0x3d   : > { %v483_v7 = vrot.slane %v481_v59, 4  ;;  %v258_v8 = vrot.slane %v256_v60, 4  ;;  %v308_v11 = vsel %vm2060_vm6, %v303_v62, %v307_v45  ;;  %v283_v12 = vrot.slane %v282_v63, 4  ;;  %520 = vst.msk [vmem:[#allocation2 + $0x2c] sm:$0xf] %vm237_vm0, %v482_v6  ;;  %760 = vmatprep.subr.bf16.mxu0 %v1888_v0  ;;  %940 = vmatpush1.bf16.msra.mxu1 %v1728_v22  ;;  %s1379_s29 = sshll.u32 %s2396_s28, 4  ;;  %s2413_s29 = int_to_ptr.vmem [resolvable:$true] %s1379_s29 }
  0x3e   : > { %v312_v13 = vor.u32 %v311_v1, %v307_v45  ;;  %v261_v14 = vrot.slane %v259_v61, 5  ;;  %392 = vrot.lane.b32.xlu1 %v308_v11, %s1889_s19  ;;  %v467_v16 = vsel %vm2015_vm5, %v1486_v2, %v466_v27  ;;  %v325_v17 = vshll.u32 %v2053_v29, 16  ;;  %941 = vmatprep.subr.bf16.mxu1 %v1888_v0  ;;  %v2174_v58 = vld [vmem:[%s1995_s18 + $0x30] sm:$0x3]  ;;  %v1734_v11 = vld [vmem:[#allocation3 + $0x10] sm:$0xff]   ;;  %s2423_s7 = scalar_lea.sflag [#allocation5], %s208_s26 }
  0x3f   : > { %v329_v18 = vshrl.u32 %v2053_v29, 16  ;;  %v335_v20 = vshll.u32 %v2056_v30, 16  ;;  %v288_v23 = vsel %vm2060_vm6, %v283_v12, %v2027_v15  ;;  %515 = vst.msk [vmem:[#allocation2 + $0x4] sm:$0xf] %vm237_vm0, %v467_v16  ;;  %v484_v3 = vrot.slane %v2053_v29, 5  ;;  %s1803_s8 = scalar_lea.vmem %s2413_s29, 640 }
  0x40   : > { %v313_v24 = vrot.slane %v312_v13, 4  ;;  %v262_v25 = vor.u32 %v261_v14, %v258_v8  ;;  %388 = vrot.lane.b32.xlu0 %v288_v23, %s1889_s19  ;;  %v2140_v26 = vrot.slane %v325_v17, 5  ;;  %v487_v32 = vrot.slane %v2056_v30, 5  ;;  %761 = vmatpush1.bf16.msra.mxu0 %v1729_v40  ;;  %v1739_v40 = vld [vmem:[#allocation3 + $0xb8] sm:$0xff]   ;;  %251 = vst.msk [vmem:[#allocation2 + $0x60] sm:$0x3] %vm250_vm8, %v2174_v58  ;;  %p1804_p10 = scmp.ne.s32.totalorder %s2413_s29, %s1803_s8 }
  0x41   : > { %v331_v27 = vrot.slane %v329_v18, 4  ;;  %v337_v28 = vrot.slane %v335_v20, 5  ;;  %v485_v34 = vsel %vm2015_vm5, %v483_v7, %v484_v3  ;;  %v486_v29 = vrot.slane %v484_v3, 4  ;;  %942 = vmatpush1.bf16.msra.mxu1 %v1730_v46  ;;  %762 = vmatprep.subr.bf16.mxu0 %v1888_v0  ;;  %v1745_v46 = vld [vmem:[#allocation3 + $0xa0] sm:$0xff]   ;;  %s1890_s15 = smov [#allocation6]  }
  0x42   : > { %v318_v15 = vsel %vm2060_vm6, %v313_v24, %v2117_v5  ;;  %v263_v33 = vrot.slane %v262_v25, 4  ;;  %v489_v37 = vrot.slane %v487_v32, 4  ;;  %521 = vst.msk [vmem:[#allocation2 + $0x34] sm:$0xf] %vm237_vm0, %v485_v34  ;;  %v319_v38 = vshrl.u32 %v2034_v19, 16  ;;  %943 = vmatprep.subr.bf16.mxu1 %v1888_v0  ;;  %v1735_v25 = vld [vmem:[#allocation3 + $0x68] sm:$0xff]   ;;  %p1805_p11 = pnand %p1804_p10, %p1952_p4 }
  0x43   : > { %394 = vrot.lane.b32.xlu1 %v318_v15, %s1889_s19  ;;  %v332_v35 = vor.u32 %v331_v27, %v2140_v26  ;;  %v339_v39 = vshrl.u32 %v2056_v30, 16  ;;  %v488_v43 = vsel %vm2015_vm5, %v486_v29, %v487_v32  ;;  %v345_v44 = vshll.u32 %v2073_v36, 16  ;;  %s1807_s9 = sshll.u32 %s1890_s15, 4  ;;  %s1808_s9 = int_to_ptr.vmem [resolvable:$false] %s1807_s9 }
  0x44   : > { %v268_v41 = vsel %vm2060_vm6, %v263_v33, %v2036_v21  ;;  %v490_v45 = vrot.slane %v2073_v36, 5  ;;  %522 = vst.msk [vmem:[#allocation2 + $0x3c] sm:$0xf] %vm237_vm0, %v488_v43  ;;  %v321_v30 = vrot.slane %v319_v38, 4  ;;  %v349_v50 = vshrl.u32 %v2073_v36, 16  ;;  %763 = vmatpush1.bf16.msra.mxu0 %v1731_v48  ;;  %v1741_v43 = vld [vmem:[#allocation3 + $0xb0] sm:$0xff]   ;;  %p1806_p13 = pneg %p1805_p11  ;;  %p1810_p0 = scmp.lt.s32.totalorder %s2413_s29, %s1808_s9 }
  0x45   : > { %384 = vrot.lane.b32.xlu0 %v268_v41, %s1889_s19  ;;  %v333_v19 = vrot.slane %v332_v35, 4  ;;  %v341_v49 = vrot.slane %v339_v39, 4  ;;  %v347_v21 = vrot.slane %v345_v44, 5  ;;  %v355_v53 = vshll.u32 %v2081_v42, 16  ;;  %944 = vmatpush1.bf16.msra.mxu1 %v1732_v54  ;;  %v1738_v35 = vld [vmem:[#allocation3] sm:$0xff]   ;;  %v1740_v41 = vld [vmem:[#allocation3 + $0x58] sm:$0xff]  }
  0x46   : > { %v491_v51 = vsel %vm2015_vm5, %v489_v37, %v490_v45  ;;  %v492_v52 = vrot.slane %v490_v45, 4  ;;  %v322_v56 = vor.u32 %v321_v30, %v2117_v5  ;;  %v351_v36 = vrot.slane %v349_v50, 4  ;;  %v1733_v5 = vld [vmem:[#allocation3 + $0x70] sm:$0xff]   ;;  %764 = vmatprep.subr.bf16.mxu0 %v1888_v0  ;;  %945 = vmatprep.subr.bf16.mxu1 %v1888_v0  ;;  %v1743_v44 = vld [vmem:[#allocation3 + $0xa8] sm:$0xff]   ;;  %v1746_v48 = vld [vmem:[#allocation3 + $0x40] sm:$0xff]   ;;  %s1809_s10 = scalar_lea.vmem %s1808_s9, 1280 }
  0x47   : > { %v338_v55 = vsel %vm2060_vm6, %v333_v19, %v337_v28  ;;  %v342_v57 = vor.u32 %v341_v49, %v337_v28  ;;  %523 = vst.msk [vmem:[#allocation2 + $0x44] sm:$0xf] %vm237_vm0, %v491_v51  ;;  %v357_v59 = vrot.slane %v355_v53, 5  ;;  %v493_v60 = vrot.slane %v2081_v42, 5  ;;  %v1736_v28 = vld [vmem:[#allocation3 + $0x8] sm:$0xff]   ;;  %p1811_p1 = scmp.lt.s32.totalorder %s1809_s10, %s1803_s8 }
  0x48   : > { %398 = vrot.lane.b32.xlu1 %v338_v55, %s1889_s19  ;;  %v359_v61 = vshrl.u32 %v2081_v42, 16  ;;  %v365_v62 = vshll.u32 %v2088_v47, 16  ;;  %v323_v63 = vrot.slane %v322_v56, 4  ;;  %v352_v2 = vor.u32 %v351_v36, %v347_v21  ;;  %765 = vmatpush1.bf16.msra.mxu0 %v1733_v5  ;;  %v1744_v45 = vld [vmem:[#allocation3 + $0x48] sm:$0xff]   ;;  %v1751_v5 = vld [vmem:[#allocation2 + $0x4] ss:$8 sps:$4 sm:$0xff]  }
  0x49   : > { %v343_v1 = vrot.slane %v342_v57, 4  ;;  %v496_v4 = vrot.slane %v2088_v47, 5  ;;  %v494_v6 = vsel %vm2015_vm5, %v492_v52, %v493_v60  ;;  %v495_v7 = vrot.slane %v493_v60, 4  ;;  %946 = vmatpush1.bf16.msra.mxu1 %v1734_v11  ;;  %766 = vmatprep.subr.bf16.mxu0 %v1888_v0  ;;  %p1812_p2 = por %p1811_p1, %p1810_p0 }
  0x4a   : > { %v361_v8 = vrot.slane %v359_v61, 4  ;;  %v367_v10 = vrot.slane %v365_v62, 5  ;;  %v328_v42 = vsel %vm2060_vm6, %v323_v63, %v2140_v26  ;;  %v353_v12 = vrot.slane %v352_v2, 4  ;;  %524 = vst.msk [vmem:[#allocation2 + $0x4c] sm:$0xf] %vm237_vm0, %v494_v6  ;;  %947 = vmatprep.subr.bf16.mxu1 %v1888_v0  ;;  %v1752_v2 = vld [vmem:[#allocation3 + $0xf8] sm:$0xff]   ;;  %1538 = vmatprep.mubr.msk.bf16.mxu1 %vm738_vm12, %v1751_v5 }
  0x4b   : > { %v498_v13 = vrot.slane %v496_v4, 4  ;;  %396 = vrot.lane.b32.xlu0 %v328_v42, %s1889_s19  ;;  %v497_v16 = vsel %vm2015_vm5, %v495_v7, %v496_v4  ;;  %v375_v17 = vshll.u32 %v2174_v58, 16  ;;  %v379_v18 = vshrl.u32 %v2174_v58, 16  ;;  %v1753_v42 = vld [vmem:[#allocation3 + $0xf0] sm:$0xff]   ;;  %p1813_p3 = pnand %p1812_p2, %p1806_p13 }
  0x4c   : > { %v362_v14 = vor.u32 %v361_v8, %v357_v59  ;;  %v348_v20 = vsel %vm2060_vm6, %v343_v1, %v347_v21  ;;  %v358_v22 = vsel %vm2060_vm6, %v353_v12, %v357_v59  ;;  %525 = vst.msk [vmem:[#allocation2 + $0x54] sm:$0xf] %vm237_vm0, %v497_v16  ;;  %v499_v23 = vrot.slane %v2174_v58, 5  ;;  %767 = vmatpush1.bf16.msra.mxu0 %v1735_v25 }
  0x4d   : > { %v369_v24 = vshrl.u32 %v2088_v47, 16  ;;  %402 = vrot.lane.b32.xlu1 %v358_v22, %s1889_s19  ;;  %v377_v26 = vrot.slane %v375_v17, 5  ;;  %v381_v27 = vrot.slane %v379_v18, 4  ;;  %948 = vmatpush1.bf16.msra.mxu1 %v1736_v28  ;;  %v1755_v18 = vld [vmem:[#allocation3 + $0xe8] sm:$0xff]   ;;  %v439_v22 = vld [vmem:[#allocation2 + $0x60] sm:$0x3] }
  0x4e   : > { %v363_v3 = vrot.slane %v362_v14, 4  ;;  %v500_v32 = vsel %vm2015_vm5, %v498_v13, %v499_v23  ;;  %v501_v15 = vrot.slane %v499_v23, 4  ;;  %768 = vmatprep.subr.bf16.mxu0 %v1888_v0  ;;  %949 = vmatprep.subr.bf16.mxu1 %v1888_v0 }
  0x4f   : > { %v371_v33 = vrot.slane %v369_v24, 4  ;;  %400 = vrot.lane.b32.xlu0 %v348_v20, %s1889_s19  ;;  %v382_v47 = vor.u32 %v381_v27, %v377_v26  ;;  %526 = vst.msk [vmem:[#allocation2 + $0x5c] sm:$0xf] %vm237_vm0, %v500_v32  ;;  %vm442_vm0 = vcmask 1041921  }
  0x50   : > { %v368_v34 = vsel %vm2060_vm6, %v363_v3, %v367_v10  ;;  %528 = vst.msk [vmem:[#allocation2 + $0x64] sm:$0x1] %vm527_vm7, %v501_v15  ;;  %769 = vmatpush1.bf16.msra.mxu0 %v1737_v9  ;;  %vm2300_vm2 = vmand %vm442_vm0, %vm443_vm1 }
  0x51   : > { %v372_v29 = vor.u32 %v371_v33, %v367_v10  ;;  %v383_v38 = vrot.slane %v382_v47, 4  ;;  %950 = vmatpush1.bf16.msra.mxu1 %v1738_v35  ;;  %778 = vmatprep.subr.bf16.mxu0 %v1888_v0  ;;  %v1756_v47 = vld [vmem:[#allocation3 + $0xe0] sm:$0xff]  }
  0x52   : > { %959 = vmatprep.subr.bf16.mxu1 %v1888_v0 }
  0x53   : > { %v373_v37 = vrot.slane %v372_v29, 4  ;;  %404 = vrot.lane.b32.xlu0 %v368_v34, %s1889_s19 }
  0x54   : > { %779 = vmatpush2.bf16.msra.mxu0 %v1739_v40 }
  0x55   : > { %v378_v39 = vsel %vm2060_vm6, %v373_v37, %v377_v26  ;;  %960 = vmatpush2.bf16.msra.mxu1 %v1740_v41  ;;  %780 = vmatprep.subr.bf16.mxu0 %v1888_v0 }
  0x56   : > { %406 = vrot.lane.b32.xlu1 %v378_v39, %s1889_s19  ;;  %961 = vmatprep.subr.bf16.mxu1 %v1888_v0  ;;  %v1759_v39 = vld [vmem:[#allocation3 + $0xd8] sm:$0xff]  }
  0x57   : > { %408 = vrot.lane.b32.xlu0 %v383_v38, %s1889_s19 }
  0x58   : > { %781 = vmatpush2.bf16.msra.mxu0 %v1741_v43 }
  0x59   : > { %962 = vmatpush2.bf16.msra.mxu1 %v1742_v31  ;;  %782 = vmatprep.subr.bf16.mxu0 %v1888_v0 }
  0x5a   : > { %963 = vmatprep.subr.bf16.mxu1 %v1888_v0 }
  0x5c   : > { %783 = vmatpush2.bf16.msra.mxu0 %v1743_v44 }
  0x5d   : > { %964 = vmatpush2.bf16.msra.mxu1 %v1744_v45  ;;  %784 = vmatprep.subr.bf16.mxu0 %v1888_v0 }
  0x5e   : > { %965 = vmatprep.subr.bf16.mxu1 %v1888_v0 }
  0x60   : > { %785 = vmatpush2.bf16.msra.mxu0 %v1745_v46 }
  0x61   : > { %966 = vmatpush2.bf16.msra.mxu1 %v1746_v48  ;;  %1204 = vmatprep.subr.bf16.mxu0 %v1888_v0 }
  0x62   : > { %1625 = vmatprep.subr.bf16.mxu1 %v1888_v0 }
  0xaa   : > { %v391_v19 = vpop.permute.xlu1 %390 }
  0xab   : > { %427 = vst.msk [vmem:[#allocation2 + $0x18] sm:$0xf] %vm423_vm10, %v391_v19  ;;  %v387_v30 = vpop.permute.xlu0 %386 }
  0xac   : > { %425 = vst.msk [vmem:[#allocation2 + $0x8] sm:$0xf] %vm423_vm10, %v387_v30  ;;  %v1760_v30 = vld [vmem:[#allocation3 + $0xd0] sm:$0xff]  }
  0xb0   : > { %v393_v49 = vpop.permute.xlu1 %392 }
  0xb1   : > { %428 = vst.msk [vmem:[#allocation2 + $0x20] sm:$0xf] %vm423_vm10, %v393_v49 }
  0xb2   : > { %v389_v50 = vpop.permute.xlu0 %388  ;;  %v2237_v52 = vld [vmem:[#allocation2 + $0x18] sm:$0xff] }
  0xb3   : > { %426 = vst.msk [vmem:[#allocation2 + $0x10] sm:$0xf] %vm423_vm10, %v389_v50  ;;  %v565_v36 = vld [vmem:[#allocation2 + $0x8] sm:$0xee] }
  0xb5   : > { %v395_v21 = vpop.permute.xlu1 %394 }
  0xb6   : > { %429 = vst.msk [vmem:[#allocation2 + $0x28] sm:$0xf] %vm423_vm10, %v395_v21 }
  0xb7   : > { %v385_v51 = vpop.permute.xlu0 %384 }
  0xb8   : > { %424 = vst.msk [vmem:[#allocation2] sm:$0xf] %vm423_vm10, %v385_v51  ;;  %v2239_v53 = vld [vmem:[#allocation2 + $0x20] sm:$0xff] }
  0xb9   : > { %v1490_v55 = vcombine.high %v2237_v52, %v2239_v53  ;;  %v1489_v56 = vcombine.low %v2237_v52, %v2239_v53 }
  0xba   : > { %v399_v54 = vpop.permute.xlu1 %398  ;;  %v533_v57 = vld [vmem:[#allocation2 + $0x10] sm:$0xff] }
  0xbb   : > { %431 = vst.msk [vmem:[#allocation2 + $0x38] sm:$0xf] %vm423_vm10, %v399_v54  ;;  %v1488_v58 = vcombine.high %v565_v36, %v533_v57  ;;  %v643_v59 = vrot.slane %v1490_v55, 1  ;;  %v1487_v60 = vcombine.low %v565_v36, %v533_v57  ;;  %v640_v61 = vrot.slane %v1489_v56, 1  ;;  %v1763_v54 = vld [vmem:[#allocation3 + $0xc8] sm:$0xff]  }
  0xbc   : > { %v1519_v11 = vcombine.high %v533_v57, %v2237_v52  ;;  %v1518_v24 = vcombine.low %v533_v57, %v2237_v52 }
  0xbd   : > { %v397_v62 = vpop.permute.xlu0 %396  ;;  %v642_v63 = vrot.slane %v1488_v58, 1  ;;  %v639_v1 = vrot.slane %v1487_v60, 1  ;;  %v536_v13 = vld [vmem:[#allocation2 + $0x28] sm:$0xff] }
  0xbe   : > { %430 = vst.msk [vmem:[#allocation2 + $0x30] sm:$0xf] %vm423_vm10, %v397_v62  ;;  %v2271_v27 = vcombine.high %v2239_v53, %v536_v13  ;;  %v2296_v31 = vcombine.low %v2239_v53, %v536_v13 }
  0xbf   : > { %v1749_v4 = vld [vmem:[#allocation2] ss:$8 sps:$4 sm:$0xff]   ;;  %v644_v6 = vsel %vm638_vm11, %v642_v63, %v643_v59  ;;  %v403_v7 = vpop.permute.xlu1 %402  ;;  %v641_v8 = vsel %vm638_vm11, %v639_v1, %v640_v61  ;;  %v1008_v1 = vld [vmem:[#allocation2 + $0x10] sm:$0xcc] }
  0xc0   : > { %1511 = vmatprep.mubr.msk.bf16.mxu0 %vm738_vm12, %v644_v6  ;;  %433 = vst.msk [vmem:[#allocation2 + $0x48] sm:$0xf] %vm423_vm10, %v403_v7  ;;  %968 = vmatmul.mubr.bf16.vlgmr.msra.gmra.mxu1 %v1749_v4  ;;  %v1544_v4 = vcombine.high %v1008_v1, %v2237_v52 }
  0xc1   : > { %v401_v10 = vpop.permute.xlu0 %400  ;;  %787 = vmatmul.mubr.bf16.vlgmr.msra.gmra.mxu0 %v641_v8  ;;  %1637 = vmatpush1.bf16.msra.mxu1 %v1752_v2  ;;  %v1094_v8 = vrot.slane %v2271_v27, 2 }
  0xc2   : > { %432 = vst.msk [vmem:[#allocation2 + $0x40] sm:$0xf] %vm423_vm10, %v401_v10  ;;  %1205 = vmatpush1.bf16.msra.mxu0 %v1752_v2  ;;  %1539 = vmatprep.mubr.msk.bf16.mxu1 %vm738_vm12, %v1519_v11  ;;  %v538_v34 = vld [vmem:[#allocation2 + $0x38] sm:$0xff]  ;;  %v1768_v2 = vld [vmem:[#allocation3 + $0x118] sm:$0xff]   ;;  %v1093_v11 = vrot.slane %v1544_v4, 2 }
  0xc3   : > { %1206 = vmatprep.subr.bf16.mxu0 %v1888_v0  ;;  %1626 = vmatprep.subr.bf16.mxu1 %v1888_v0 }
  0xc5   : > { %v405_v12 = vpop.permute.xlu0 %404  ;;  %v2257_v14 = vld [vmem:[#allocation2 + $0x30] sm:$0xff]  ;;  %1638 = vmatpush1.bf16.msra.mxu1 %v1753_v42 }
  0xc6   : > { %434 = vst.msk [vmem:[#allocation2 + $0x50] sm:$0xf] %vm423_vm10, %v405_v12  ;;  %1207 = vmatpush1.bf16.msra.mxu0 %v1753_v42  ;;  %v1492_v16 = vcombine.high %v536_v13, %v2257_v14  ;;  %v1491_v17 = vcombine.low %v536_v13, %v2257_v14  ;;  %1627 = vmatprep.subr.bf16.mxu1 %v1888_v0  ;;  %v1772_v12 = vld [vmem:[#allocation3 + $0x110] sm:$0xff]  }
  0xc7   : > { %1208 = vmatprep.subr.bf16.mxu0 %v1888_v0  ;;  %v2286_v37 = vld [vmem:[#allocation2 + $0x48] sm:$0xff]  ;;  %v2307_v48 = vcombine.high %v2257_v14, %v538_v34  ;;  %v2323_v57 = vcombine.low %v2257_v14, %v538_v34  ;;  %v1095_v14 = vsel %vm1089_vm3, %v1093_v11, %v1094_v8 }
  0xc8   : > { %v407_v23 = vpop.permute.xlu1 %406  ;;  %v647_v25 = vrot.slane %v1492_v16, 1  ;;  %v645_v3 = vrot.slane %v1491_v17, 1  ;;  %976 = vmatmul.mubr.bf16.gmra.mxu1 %v1518_v24  ;;  %v1773_v16 = vld [vmem:[#allocation3 + $0x108] sm:$0xff]   ;;  %v1091_v24 = vrot.slane %v2296_v31, 2 }
  0xc9   : > { %435 = vst.msk [vmem:[#allocation2 + $0x58] sm:$0xf] %vm423_vm10, %v407_v23  ;;  %v409_v26 = vpop.permute.xlu0 %408  ;;  %v2273_v28 = vld [vmem:[#allocation2 + $0x40] sm:$0xff]  ;;  %1639 = vmatpush1.bf16.msra.mxu1 %v1755_v18  ;;  %1540 = vmatprep.mubr.msk.bf16.mxu1 %vm738_vm12, %v2271_v27  ;;  %v1774_v23 = vld [vmem:[#allocation3 + $0x100] sm:$0xff]  }
  0xca   : > { %v440_v32 = vsel %vm2262_vm15, %v409_v26, %v439_v22  ;;  %v648_v15 = vsel %vm638_vm11, %v643_v59, %v647_v25  ;;  %v646_v33 = vsel %vm638_vm11, %v640_v61, %v645_v3  ;;  %1209 = vmatpush1.bf16.msra.mxu0 %v1755_v18  ;;  %v1494_v29 = vcombine.high %v538_v34, %v2273_v28  ;;  %v1765_v59 = vld [vmem:[#allocation3 + $0xc0] sm:$0xff]  }
  0xcb   : > { %441 = vst [vmem:[#allocation2 + $0x60] sm:$0x3] %v440_v32  ;;  %1512 = vmatprep.mubr.msk.bf16.mxu0 %vm738_vm12, %v648_v15  ;;  %v1493_v9 = vcombine.low %v538_v34, %v2273_v28  ;;  %1210 = vmatprep.subr.bf16.mxu0 %v1888_v0  ;;  %v2328_v58 = vcombine.high %v2273_v28, %v2286_v37 }
  0xcc   : > { %795 = vmatmul.mubr.bf16.gmra.mxu0 %v646_v33  ;;  %1628 = vmatprep.subr.bf16.mxu1 %v1888_v0  ;;  %v651_v35 = vrot.slane %v1494_v29, 1  ;;  %v1524_v7 = vcombine.low %v2273_v28, %v2286_v37  ;;  %v1543_v22 = vcombine.low %v1008_v1, %v2237_v52 }
  0xcd   : > { %v2288_v38 = vld [vmem:[#allocation2 + $0x50] sm:$0xff]  ;;  %1640 = vmatpush1.bf16.msra.mxu1 %v1756_v47  ;;  %v649_v43 = vrot.slane %v1493_v9, 1  ;;  %v1102_v10 = vrot.slane %v2328_v58, 2 }
  0xce   : > { %1211 = vmatpush1.bf16.msra.mxu0 %v1756_v47  ;;  %v1496_v40 = vcombine.high %v2286_v37, %v2288_v38  ;;  %v652_v41 = vsel %vm638_vm11, %v647_v25, %v651_v35  ;;  %1629 = vmatprep.subr.bf16.mxu1 %v1888_v0  ;;  %v1495_v53 = vcombine.low %v2286_v37, %v2288_v38  ;;  %v1090_v27 = vrot.slane %v1543_v22, 2  ;;  %v2385_v22 = vld [vmem:[%s2472_s2] ss:$0 sm:$0xff] }
  0xcf   : > { %1212 = vmatprep.subr.bf16.mxu0 %v1888_v0  ;;  %1513 = vmatprep.mubr.msk.bf16.mxu0 %vm738_vm12, %v652_v41  ;;  %v650_v51 = vsel %vm638_vm11, %v645_v3, %v649_v43  ;;  %v1098_v3 = vrot.slane %v2307_v48, 2  ;;  %v1100_v28 = vrot.slane %v1524_v7, 2  ;;  %v1096_v47 = vrot.slane %v2323_v57, 2 }
  0xd0   : > { %v567_v44 = vld [vmem:[#allocation2 + $0x58] sm:$0x11]  ;;  %v655_v46 = vrot.slane %v1496_v40, 1  ;;  %984 = vmatmul.mubr.bf16.gmra.mxu1 %v2296_v31  ;;  %v653_v56 = vrot.slane %v1495_v53, 1  ;;  %v1092_v32 = vsel %vm1089_vm3, %v1090_v27, %v1091_v24 }
  0xd1   : > { %1641 = vmatpush1.bf16.msra.mxu1 %v1759_v39  ;;  %v1498_v50 = vcombine.high %v567_v44, %v567_v44  ;;  %1541 = vmatprep.mubr.msk.bf16.mxu1 %vm738_vm12, %v2307_v48  ;;  %v1017_v36 = vld [vmem:[#allocation2 + $0x58] sm:$0xff]  ;;  %v1497_v63 = vcombine.low %v567_v44, %v567_v44  ;;  %v1099_v33 = vsel %vm1089_vm3, %v1094_v8, %v1098_v3 }
  0xd2   : > { %v445_v19 = vld [vmem:[#allocation2 + $0x60] sm:$0x2]  ;;  %1213 = vmatpush1.bf16.msra.mxu0 %v1759_v39  ;;  %v656_v49 = vsel %vm638_vm11, %v651_v35, %v655_v46  ;;  %1630 = vmatprep.subr.bf16.mxu1 %v1888_v0  ;;  %v1552_v61 = vcombine.high %v2288_v38, %v1017_v36  ;;  %v654_v62 = vsel %vm638_vm11, %v649_v43, %v653_v56 }
  0xd3   : > { %v446_v21 = vsel %vm2300_vm2, 0, %v445_v19  ;;  %1214 = vmatprep.subr.bf16.mxu0 %v1888_v0  ;;  %v659_v55 = vrot.slane %v1498_v50, 1  ;;  %v657_v6 = vrot.slane %v1497_v63, 1  ;;  %v1551_v18 = vcombine.low %v2288_v38, %v1017_v36 }
  0xd4   : > { %447 = vst [vmem:[#allocation2 + $0x60] sm:$0x2] %v446_v21  ;;  %803 = vmatmul.mubr.bf16.gmra.mxu0 %v650_v51  ;;  %v1106_v5 = vrot.slane %v1552_v61, 2  ;;  %v1097_v29 = vsel %vm1089_vm3, %v1091_v24, %v1096_v47  ;;  %v1103_v35 = vsel %vm1089_vm3, %v1098_v3, %v1102_v10  ;;  %v1101_v37 = vsel %vm1089_vm3, %v1096_v47, %v1100_v28 }
  0xd5   : > { %1514 = vmatprep.mubr.msk.bf16.mxu0 %vm738_vm12, %v656_v49  ;;  %1642 = vmatpush1.bf16.msra.mxu1 %v1760_v30  ;;  %v660_v60 = vsel %vm638_vm11, %v655_v46, %v659_v55  ;;  %v658_v13 = vsel %vm638_vm11, %v653_v56, %v657_v6  ;;  %v1104_v25 = vrot.slane %v1551_v18, 2 }
  0xd6   : > { %1215 = vmatpush1.bf16.msra.mxu0 %v1760_v30  ;;  %1631 = vmatprep.subr.bf16.mxu1 %v1888_v0  ;;  %v1107_v42 = vsel %vm1089_vm3, %v1102_v10, %v1106_v5 }
  0xd7   : > { %1216 = vmatprep.subr.bf16.mxu0 %v1888_v0  ;;  %v1105_v52 = vsel %vm1089_vm3, %v1100_v28, %v1104_v25 }
  0xd8   : > { %992 = vmatmul.mubr.bf16.gmra.mxu1 %v2323_v57 }
  0xd9   : > { %1643 = vmatpush1.bf16.msra.mxu1 %v1763_v54  ;;  %1542 = vmatprep.mubr.msk.bf16.mxu1 %vm738_vm12, %v2328_v58 }
  0xda   : > { %1217 = vmatpush1.bf16.msra.mxu0 %v1763_v54  ;;  %1632 = vmatprep.subr.bf16.mxu1 %v1888_v0 }
  0xdb   : > { %1218 = vmatprep.subr.bf16.mxu0 %v1888_v0  ;;  %v1018_v17 = vld [vmem:[#allocation2 + $0x60] sm:$0x33] }
  0xdc   : > { %811 = vmatmul.mubr.bf16.gmra.mxu0 %v654_v62  ;;  %v1554_v20 = vcombine.high %v1018_v17, %v1018_v17  ;;  %v1553_v15 = vcombine.low %v1018_v17, %v1018_v17 }
  0xdd   : > { %1515 = vmatprep.mubr.msk.bf16.mxu0 %vm738_vm12, %v660_v60  ;;  %1644 = vmatpush1.bf16.msra.mxu1 %v1765_v59 }
  0xde   : > { %1219 = vmatpush1.bf16.msra.mxu0 %v1765_v59  ;;  %1633 = vmatprep.subr.bf16.mxu1 %v1888_v0  ;;  %v1110_v26 = vrot.slane %v1554_v20, 2  ;;  %v1108_v34 = vrot.slane %v1553_v15, 2 }
  0xdf   : > { %1228 = vmatprep.subr.bf16.mxu0 %v1888_v0 }
  0xe0   : > { %1000 = vmatmul.mubr.bf16.gmra.mxu1 %v1524_v7  ;;  %v1109_v9 = vsel %vm1089_vm3, %v1104_v25, %v1108_v34 }
  0xe1   : > { %1645 = vmatpush2.bf16.msra.mxu1 %v1768_v2  ;;  %1570 = vmatprep.mubr.msk.bf16.mxu1 %vm738_vm12, %v1107_v42 }
  0xe2   : > { %1229 = vmatpush2.bf16.msra.mxu0 %v1768_v2  ;;  %1634 = vmatprep.subr.bf16.mxu1 %v1888_v0 }
  0xe3   : > { %1230 = vmatprep.subr.bf16.mxu0 %v1888_v0 }
  0xe4   : > { %819 = vmatmul.mubr.bf16.gmra.mxu0 %v658_v13 }
  0xe5   : > { %1567 = vmatprep.mubr.msk.bf16.mxu0 %vm738_vm12, %v1095_v14  ;;  %1646 = vmatpush2.bf16.msra.mxu1 %v1772_v12 }
  0xe6   : > { %1231 = vmatpush2.bf16.msra.mxu0 %v1772_v12  ;;  %1635 = vmatprep.subr.bf16.mxu1 %v1888_v0 }
  0xe7   : > { %1232 = vmatprep.subr.bf16.mxu0 %v1888_v0 }
  0xe9   : > { %1647 = vmatpush2.bf16.msra.mxu1 %v1773_v16 }
  0xea   : > { %1233 = vmatpush2.bf16.msra.mxu0 %v1773_v16  ;;  %1636 = vmatprep.subr.bf16.mxu1 %v1888_v0 }
  0xeb   : > { %1234 = vmatprep.subr.bf16.mxu0 %v1888_v0  ;;  %v1111_v0 = vsel %vm1089_vm3, %v1106_v5, %v1110_v26 }
  0xed   : > { %1648 = vmatpush2.bf16.msra.mxu1 %v1774_v23 }
  0xee   : > { %1235 = vmatpush2.bf16.msra.mxu0 %v1774_v23 }
  0xf0   : > { %1261 = vmatmul.mubr.bf16.vlgmr.msra.gmra.mxu1 %v1105_v52 }
  0xf1   : > { %1237 = vmatmul.mubr.bf16.vlgmr.msra.gmra.mxu0 %v1092_v32  ;;  %1571 = vmatprep.mubr.msk.bf16.mxu1 %vm738_vm12, %v1111_v0 }
  0xf2   : > { %1568 = vmatprep.mubr.msk.bf16.mxu0 %vm738_vm12, %v1099_v33 }
  0xf8   : > { %1269 = vmatmul.mubr.bf16.gmra.mxu1 %v1109_v9 }
  0xf9   : > { %1245 = vmatmul.mubr.bf16.gmra.mxu0 %v1097_v29 }
  0xfa   : > { %1569 = vmatprep.mubr.msk.bf16.mxu0 %vm738_vm12, %v1103_v35 }
 0x101   : > { %1253 = vmatmul.mubr.bf16.gmra.mxu0 %v1101_v37 }
 0x180   : > { %v969_v39 = vpop.f32.mrf.mxu1 }
 0x181   : > { %v788_v38 = vpop.f32.mrf.mxu0 }
 0x182   : > { %v971_v41 = vpop.f32.mrf.mxu1  ;;  %v970_v14 = vadd.f32 %v969_v39, %v788_v38 }
 0x183   : > { %v790_v40 = vpop.f32.mrf.mxu0 }
 0x184   : > { %v972_v31 = vpop.f32.mrf.mxu1 }
 0x185   : > { %v791_v43 = vpop.f32.mrf.mxu0 }
 0x186   : > { %v974_v45 = vpop.f32.mrf.mxu1  ;;  %v973_v3 = vadd.f32 %v972_v31, %v791_v43 }
 0x187   : > { %v793_v44 = vpop.f32.mrf.mxu0 }
 0x188   : > { %v977_v46 = vpop.f32.mrf.mxu1 }
 0x18a   : > { %v979_v48 = vpop.f32.mrf.mxu1 }
 0x18c   : > { %v796_v19 = vpop.f32.mrf.mxu0  ;;  %v2372_v30 = vpop.f32.mrf.mxu1 }
 0x18d   : > { %v978_v34 = vadd.f32 %v977_v46, %v796_v19 }
 0x18e   : > { %v798_v49 = vpop.f32.mrf.mxu0  ;;  %v982_v50 = vpop.f32.mrf.mxu1 }
 0x190   : > { %v799_v21 = vpop.f32.mrf.mxu0  ;;  %v2374_v51 = vpop.f32.mrf.mxu1 }
 0x191   : > { %v981_v49 = vadd.f32 %v2372_v30, %v799_v21 }
 0x192   : > { %v801_v53 = vpop.f32.mrf.mxu0  ;;  %v987_v54 = vpop.f32.mrf.mxu1 }
 0x194   : > { %v2376_v55 = vpop.f32.mrf.mxu0  ;;  %v2378_v56 = vpop.f32.mrf.mxu1 }
 0x195   : > { %v986_v21 = vadd.f32 %v2374_v51, %v2376_v55 }
 0x196   : > { %v806_v57 = vpop.f32.mrf.mxu0  ;;  %v990_v36 = vpop.f32.mrf.mxu1 }
 0x198   : > { %v2380_v58 = vpop.f32.mrf.mxu0  ;;  %v993_v59 = vpop.f32.mrf.mxu1 }
 0x19a   : > { %v809_v60 = vpop.f32.mrf.mxu0  ;;  %v995_v61 = vpop.f32.mrf.mxu1 }
 0x19c   : > { %v812_v62 = vpop.f32.mrf.mxu0  ;;  %v996_v63 = vpop.f32.mrf.mxu1 }
 0x19d   : > { %v994_v16 = vadd.f32 %v993_v59, %v812_v62 }
 0x19e   : > { %v814_v1 = vpop.f32.mrf.mxu0  ;;  %v998_v2 = vpop.f32.mrf.mxu1 }
 0x1a0   : > { %v815_v4 = vpop.f32.mrf.mxu0  ;;  %v1001_v5 = vpop.f32.mrf.mxu1 }
 0x1a1   : > { %v997_v26 = vadd.f32 %v996_v63, %v815_v4 }
 0x1a2   : > { %v817_v6 = vpop.f32.mrf.mxu0  ;;  %v1003_v7 = vpop.f32.mrf.mxu1 }
 0x1a4   : > { %v820_v8 = vpop.f32.mrf.mxu0  ;;  %v1004_v10 = vpop.f32.mrf.mxu1 }
 0x1a5   : > { %v1002_v29 = vadd.f32 %v1001_v5, %v820_v8 }
 0x1a6   : > { %v822_v11 = vpop.f32.mrf.mxu0  ;;  %v1006_v42 = vpop.f32.mrf.mxu1 }
 0x1a8   : > { %v823_v12 = vpop.f32.mrf.mxu0 }
 0x1a9   : > { %v1005_v50 = vadd.f32 %v1004_v10, %v823_v12  ;;  %v989_v10 = vadd.f32 %v2378_v56, %v2380_v58 }
 0x1aa   : > { %v825_v13 = vpop.f32.mrf.mxu0 }
 0x1b0   : > { %v1262_v18 = vpop.f32.mrf.mxu1 }
 0x1b1   : > { %v1238_v17 = vpop.f32.mrf.mxu0  ;;  %v1283_v23 = vadd.f32 %v1262_v18, %v994_v16 }
 0x1b2   : > { %v1277_v20 = vadd.f32 %v1238_v17, %v970_v14  ;;  %v1264_v25 = vpop.f32.mrf.mxu1 }
 0x1b3   : > { %v1240_v24 = vpop.f32.mrf.mxu0  ;;  %v1300_v28 = vadd.f32 %v2385_v22, %v1283_v23 }
 0x1b4   : > { %v1294_v27 = vadd.f32 %v2385_v22, %v1277_v20  ;;  %v1265_v52 = vpop.f32.mrf.mxu1 }
 0x1b5   : > { %v1241_v32 = vpop.f32.mrf.mxu0  ;;  %v1284_v33 = vadd.f32 %v1265_v52, %v997_v26  ;;  %v1310_v38 = vmax.f32 %v1300_v28, 0.0 }
 0x1b6   : > { %v1278_v15 = vadd.f32 %v1241_v32, %v973_v3  ;;  %v1267_v47 = vpop.f32.mrf.mxu1  ;;  %v1304_v37 = vmax.f32 %v1294_v27, 0.0 }
 0x1b7   : > { %v1243_v0 = vpop.f32.mrf.mxu0  ;;  %v1301_v35 = vadd.f32 %v2385_v22, %v1284_v33 }
 0x1b8   : > { %v1295_v9 = vadd.f32 %v2385_v22, %v1278_v15  ;;  %v1270_v40 = vpop.f32.mrf.mxu1 }
 0x1b9   : > { %v1246_v39 = vpop.f32.mrf.mxu0  ;;  %v1311_v43 = vmax.f32 %v1301_v35, 0.0  ;;  %v1285_v44 = vadd.f32 %v1270_v40, %v1002_v29 }
 0x1ba   : > { %v1305_v41 = vmax.f32 %v1295_v9, 0.0  ;;  %v1279_v31 = vadd.f32 %v1246_v39, %v978_v34  ;;  %v1272_v48 = vpop.f32.mrf.mxu1 }
 0x1bb   : > { %v1248_v45 = vpop.f32.mrf.mxu0  ;;  %v1614_v46 = vpack.c.bf16 %v1311_v43, %v1310_v38  ;;  %v1302_v36 = vadd.f32 %v2385_v22, %v1285_v44 }
 0x1bc   : > { %v1599_v53 = vpack.c.bf16 %v1305_v41, %v1304_v37  ;;  %v1296_v19 = vadd.f32 %v2385_v22, %v1279_v31  ;;  %v1273_v57 = vpop.f32.mrf.mxu1 }
 0x1bd   : > { %v1249_v54 = vpop.f32.mrf.mxu0  ;;  %1623 = vst [vmem:[%s2396_s28 + $0x18] sm:$0xff] %v1614_v46   ;;  %v1286_v60 = vadd.f32 %v1273_v57, %v1005_v50  ;;  %v1312_v4 = vmax.f32 %v1302_v36, 0.0 }
 0x1be   : > { %1600 = vst [vmem:[%s2396_s28] sm:$0xff] %v1599_v53   ;;  %v1280_v59 = vadd.f32 %v1249_v54, %v981_v49  ;;  %v1275_v30 = vpop.f32.mrf.mxu1  ;;  %v1306_v1 = vmax.f32 %v1296_v19, 0.0 }
 0x1bf   : > { %v1251_v61 = vpop.f32.mrf.mxu0  ;;  %v1303_v63 = vadd.f32 %v2385_v22, %v1286_v60 }
 0x1c0   : > { %v1297_v62 = vadd.f32 %v2385_v22, %v1280_v59 }
 0x1c1   : > { %v1254_v2 = vpop.f32.mrf.mxu0  ;;  %v1313_v6 = vmax.f32 %v1303_v63, 0.0 }
 0x1c2   : > { %v1307_v5 = vmax.f32 %v1297_v62, 0.0  ;;  %v1281_v7 = vadd.f32 %v1254_v2, %v986_v21 }
 0x1c3   : > { %v1256_v8 = vpop.f32.mrf.mxu0  ;;  %v1619_v42 = vpack.c.bf16 %v1313_v6, %v1312_v4 }
 0x1c4   : > { %v1604_v11 = vpack.c.bf16 %v1307_v5, %v1306_v1  ;;  %v1298_v55 = vadd.f32 %v2385_v22, %v1281_v7 }
 0x1c5   : > { %v1257_v51 = vpop.f32.mrf.mxu0  ;;  %1624 = vst [vmem:[%s2396_s28 + $0x20] sm:$0xff] %v1619_v42  }
 0x1c6   : > { %1621 = vst [vmem:[%s2396_s28 + $0x8] sm:$0xff] %v1604_v11   ;;  %v1282_v12 = vadd.f32 %v1257_v51, %v989_v10  ;;  %v1308_v16 = vmax.f32 %v1298_v55, 0.0 }
 0x1c7   : > { %v1259_v13 = vpop.f32.mrf.mxu0 }
 0x1c8   : > { %v1299_v14 = vadd.f32 %v2385_v22, %v1282_v12 }
 0x1ca   : > { %v1309_v17 = vmax.f32 %v1299_v14, 0.0 }
 0x1cc   : > { %v1609_v56 = vpack.c.bf16 %v1309_v17, %v1308_v16 }
 0x1ce   : > { %1622 = vst [vmem:[%s2396_s28 + $0x10] sm:$0xff] %v1609_v56  }
 0x1cf   : > { %1816 = shalt.err (!%p1813_p3)
}
 0x1d0   : > { %s1817_s11 = scalar_lea.hbm %s2418_s6, 640  ;;  %s1821_s23 = scalar_lea.hbm %s2473_s3, 1280 }
 0x1d1   : > { %p1818_p5 = scmp.ne.s32.totalorder %s2418_s6, %s1817_s11  ;;  %p1822_p9 = scmp.lt.s32.totalorder %s2418_s6, %s2473_s3 }
 0x1d2   : > { %p1823_p12 = scmp.lt.s32.totalorder %s1821_s23, %s1817_s11 }
 0x1d3   : > { %p1819_p6 = pnand %p1818_p5, %p1952_p4 }
 0x1d4   : > { %p1824_p10 = por %p1823_p12, %p1822_p9 }
 0x1d5   : > { %p1820_p7 = pneg %p1819_p6 }
 0x1d7   : > { %p1825_p11 = pnand %p1824_p10, %p1820_p7 }
 0x1d9   : > { %1828 = shalt.err (!%p1825_p11)
}
 0x1da   : > { %s1891_s28 = smov 4  }
 0x1db   : > { %1656 = dma.vmem_to_hbm [thread:$0]  (%p1952_p4), %s2413_s29, 640, %s2418_s6, %s2423_s7, %s1889_s19, %s1889_s19, %s1891_s28  }
 0x1dc PF: > { %p1668_p13 = scmp.ge.s32.totalorder %s1883_s17, 2  ;;  %s1394_s30 = sand.u32 1, %s1863_s12  }
 0x1dd   : > { %s1395_s4 = scalar_lea.sflag [#allocation5], %s1394_s30 }
 0x1de   : > { %p1663_p0 = pnand %p1668_p13, %p1959_p8 }
 0x1e0   : > { %p1664_p1 = pneg %p1663_p0 }
 0x1e2   : > { %1858 = dma.done.wait (%p1664_p1), %s1395_s4, 640  }
 0x1e3   : > { %1860 = vsyncadd (%p1664_p1), %s1395_s4, 4294966656  ;;  %s17_s17 = sadd.s32 1, %s1883_s17   ;;  %s2486_s12 = smov %s1867_s13 }
 0x1e4   : > { %p14_p2 = scmp.ge.s32.totalorder %s17_s17, 4   ;;  %s2487_s13 = smov %s1871_s14 }
 0x1e5   : > { %s2488_s14 = smov %s1965_s25  ;;  %s2489_s15 = smov %s1879_s16 }
 0x1e6   : > { %s2490_s16 = smov %s2492_s20  ;;  %16 = sbr.rel (!%p14_p2) target bundleno = 5 (0x5), region = 82 }
 0x1eb   :  { %1400 = vsyncpa [#allocation4], 1 }
 0x1ec   :  { %1402 = vsyncpa [#allocation4 + $0x1], 1 }
 0x1ed   :  { %1403 = vsyncpa [#allocation5], 1 }
 0x1ee   :  { %1405 = vsyncpa [#allocation5 + $0x1], 1 }

</bundles_post_ra>
